<compile_context>
chip_gen: v5e
topology: v5e:2x2
jax: 0.10.0
libtpu: 0.0.40
codegen_flags: <defaults>
</compile_context>

<pallas_src>
import math
from functools import partial

import jax
import jax.numpy as jnp
import numpy as np
from jax.experimental import pallas as pl
from jax.experimental.pallas import tpu as pltpu


def _combined_loss_kernel(x_ref, kron_ref, w_ref, out_ref, *,
                          alpha, beta, c, f, freq_norm, perc_norm):
    """One grid step = one batch image.

    x_ref    : (2*C, H*W)  rows [:C] = sr channels, rows [C:] = hr channels
    kron_ref : (H*W, H*W)  kron(D, D)^T  (2-D DCT as one lane-dense matmul)
    w_ref    : (2*F, 2*C)  block-diag(Wp, Wp) (sr & hr features in one matmul)
    out_ref  : (1, 1)      scalar accumulator, same block every grid step
    """
    step = pl.program_id(0)

    @pl.when(step == 0)
    def _init():
        out_ref[...] = jnp.zeros_like(out_ref)

    x = x_ref[...]                                    # (2C, HW), lane-dense

    # ---- frequency loss -------------------------------------------------------
    # DCT is linear: DCT2(sr) - DCT2(hr) == DCT2(sr - hr)  -> transform once.
    diff = x[:c, :] - x[c:, :]                        # (C, HW)
    dct = jnp.dot(diff, kron_ref[...],
                  preferred_element_type=jnp.float32)             # (C, HW) MXU
    freq_part = jnp.sum(jnp.abs(dct), keepdims=True)              # (1, 1)

    # ---- perceptual loss ------------------------------------------------------
    # Single block-diagonal matmul produces sr- and hr-features together.
    feat = jnp.maximum(
        jnp.dot(w_ref[...], x, preferred_element_type=jnp.float32), 0.0)  # (2F, HW)
    d = feat[:f, :] - feat[f:, :]                     # (F, HW)
    perc_part = jnp.sum(d * d, keepdims=True)         # (1, 1)

    out_ref[...] += (alpha * freq_norm) * freq_part + (beta * perc_norm) * perc_part


def combined_loss(sr, hr, dct_mat, wp, *, alpha=1.0, beta=1.0):
    N, C, H, W = sr.shape
    F = wp.shape[0]
    HW = H * W

    # Layout plumbing in the wrapper (free): lane-dense (channels, H*W) slabs,
    # sr and hr stacked along the channel axis so one block feeds both losses.
    x_pair = jnp.concatenate(
        [sr.reshape(N, C, HW), hr.reshape(N, C, HW)], axis=1)     # (N, 2C, HW)

    # 2-D DCT as one Kronecker-factored matrix: vec(D X D^T) = vec(X) @ kron(D,D)^T.
    # HW = 256 exactly matches the MXU contraction depth on v6e/v7x.
    # TODO(synk): for large (real SR) images, use the separable two-pass
    # D @ X @ D^T with spatial tiling instead of the dense Kronecker matrix.
    kron_t = jnp.kron(dct_mat, dct_mat).T                         # (HW, HW)

    # Block-diagonal 1x1-conv weights: one matmul -> sr & hr features.
    w_pair = jnp.kron(jnp.eye(2, dtype=wp.dtype), wp)             # (2F, 2C)

    kernel = partial(_combined_loss_kernel,
                     alpha=float(alpha), beta=float(beta), c=C, f=F,
                     freq_norm=1.0 / (N * C * H * W),
                     perc_norm=1.0 / (N * F * H * W))

    out = pl.pallas_call(
        kernel,
        out_shape=jax.ShapeDtypeStruct((1, 1), jnp.float32),
        grid_spec=pltpu.PrefetchScalarGridSpec(
            num_scalar_prefetch=0,
            grid=(N,),
            in_specs=[
                pl.BlockSpec((None, 2 * C, HW), lambda n: (n, 0, 0)),  # per-image slab
                pl.BlockSpec((HW, HW), lambda n: (0, 0)),              # DCT matrix
                pl.BlockSpec((2 * F, 2 * C), lambda n: (0, 0)),        # conv weights
            ],
            out_specs=pl.BlockSpec((1, 1), lambda n: (0, 0)),
        ),
        compiler_params=pltpu.CompilerParams(
            # Output accumulates across the batch axis -> reduction axis.
            # TODO(synk): for production sizes add a "parallel" spatial-tile axis
            # with per-core partials so v7x's two TensorCores both contribute.
            dimension_semantics=("arbitrary",)),
    )(x_pair, kron_t, w_pair)
    return out[0, 0]


def make_dct_matrix(n):
    """Orthonormal DCT-II matrix, deterministic."""
    k = np.arange(n)[:, None].astype(np.float64)
    m = np.arange(n)[None, :].astype(np.float64)
    D = np.sqrt(2.0 / n) * np.cos(math.pi * (2.0 * m + 1.0) * k / (2.0 * n))
    D[0, :] *= 1.0 / math.sqrt(2.0)
    return jnp.asarray(D, dtype=jnp.float32)


def reference_loss(sr, hr, D, Wp, alpha=1.0, beta=1.0):
    """Pure-JAX reference for correctness check."""
    dx = jnp.einsum('ij,ncjk,lk->ncil', D, sr, D)
    dy = jnp.einsum('ij,ncjk,lk->ncil', D, hr, D)
    freq = jnp.mean(jnp.abs(dx - dy))
    fx = jax.nn.relu(jnp.einsum('fc,nchw->nfhw', Wp, sr))
    fy = jax.nn.relu(jnp.einsum('fc,nchw->nfhw', Wp, hr))
    perc = jnp.mean((fx - fy) ** 2)
    return alpha * freq + beta * perc


if __name__ == "__main__":
    N, C, H, W = 2, 4, 16, 16   # small NCHW shapes
    F = 8                       # perceptual feature channels
    alpha, beta = 1.0, 1.0

    key = jax.random.PRNGKey(0)
    k_sr, k_hr, k_wp = jax.random.split(key, 3)
    sr = jax.random.normal(k_sr, (N, C, H, W), dtype=jnp.float32)
    hr = jax.random.normal(k_hr, (N, C, H, W), dtype=jnp.float32)

    # Deterministic "parameters": DCT basis + fixed 1x1-conv perceptual weights.
    D = make_dct_matrix(H)
    Wp = jax.random.normal(k_wp, (F, C), dtype=jnp.float32) * 0.1

    out = combined_loss(sr, hr, D, Wp, alpha=alpha, beta=beta)
    out = jax.block_until_ready(out)

    ref = jax.block_until_ready(reference_loss(sr, hr, D, Wp, alpha, beta))
    np.testing.assert_allclose(np.asarray(out), np.asarray(ref), rtol=1e-5, atol=1e-5)

    print("KERNEL_OK")
</pallas_src>

<mosaic_0001>
module attributes {stable_mosaic.version = 11 : i64} {
  func.func @_combined_loss_kernel(%arg0: i32, %arg1: memref<1x8x256xf32, #tpu.memory_space<vmem>>, %arg2: memref<256x256xf32, #tpu.memory_space<vmem>>, %arg3: memref<16x8xf32, #tpu.memory_space<vmem>>, %arg4: memref<1x1xf32, #tpu.memory_space<vmem>>) attributes {dimension_semantics = [#tpu.dimension_semantics<arbitrary>], iteration_bounds = array<i64: 2>, scalar_prefetch = 0 : i64, scratch_operands = 0 : i64, tpu.core_type = #tpu.core_type<tc>, window_params = [{transform_indices = @transform_0, window_bounds = array<i64: 1, 8, 256>}, {pipeline_mode = #tpu.pipeline_mode<synchronous>, transform_indices = @transform_1, window_bounds = array<i64: 256, 256>}, {pipeline_mode = #tpu.pipeline_mode<synchronous>, transform_indices = @transform_2, window_bounds = array<i64: 16, 8>}, {pipeline_mode = #tpu.pipeline_mode<synchronous>, transform_indices = @transform_3, window_bounds = array<i64: 1, 1>}]} {
    %c0_i32 = arith.constant 0 : i32
    %0 = arith.cmpi eq, %arg0, %c0_i32 : i32
    %1 = arith.extui %0 : i1 to i32
    %c0_i32_0 = arith.constant 0 : i32
    %2 = arith.cmpi ne, %1, %c0_i32_0 : i32
    scf.if %2 {
      %cst_17 = arith.constant 0.000000e+00 : f32
      %37 = vector.broadcast %cst_17 : f32 to vector<1x1xf32>
      %c0_18 = arith.constant 0 : index
      %c0_19 = arith.constant 0 : index
      %38 = vector.load %arg4[%c0_18, %c0_19] : memref<1x1xf32, #tpu.memory_space<vmem>>, vector<1x1xf32>
      tpu.vector_store %arg4[%c0_18, %c0_19], %37 {strides = array<i32>} : memref<1x1xf32, #tpu.memory_space<vmem>>, vector<1x1xf32>,
    } else {
    }
    %c0 = arith.constant 0 : index
    %c0_1 = arith.constant 0 : index
    %c0_2 = arith.constant 0 : index
    %3 = vector.load %arg1[%c0, %c0_1, %c0_2] : memref<1x8x256xf32, #tpu.memory_space<vmem>>, vector<1x8x256xf32>
    %4 = vector.shape_cast %3 : vector<1x8x256xf32> to vector<8x256xf32>
    %5 = vector.extract_strided_slice %4 {offsets = [0, 0], sizes = [4, 256], strides = [1, 1]} : vector<8x256xf32> to vector<4x256xf32>
    %6 = vector.extract_strided_slice %4 {offsets = [4, 0], sizes = [4, 256], strides = [1, 1]} : vector<8x256xf32> to vector<4x256xf32>
    %7 = arith.subf %5, %6 : vector<4x256xf32>
    %c0_3 = arith.constant 0 : index
    %c0_4 = arith.constant 0 : index
    %8 = vector.load %arg2[%c0_3, %c0_4] : memref<256x256xf32, #tpu.memory_space<vmem>>, vector<256x256xf32>
    %cst = arith.constant dense<0.000000e+00> : vector<4x256xf32>
    %9 = tpu.matmul %7, %8, %cst {dimension_numbers = #tpu.dot_dimension_numbers<[1], [0], [0], [1], [0, 0, 1, 1], [], []>} : vector<4x256xf32>, vector<256x256xf32>, vector<4x256xf32> -> vector<4x256xf32>
    %10 = math.absf %9 : vector<4x256xf32>
    %11 = vector.shape_cast %10 : vector<4x256xf32> to vector<1x4x256xf32>
    %cst_5 = arith.constant dense<0.000000e+00> : vector<1xf32>
    %12 = vector.multi_reduction <add>, %11, %cst_5 [1, 2] : vector<1x4x256xf32> to vector<1xf32>
    %13 = vector.shape_cast %12 : vector<1xf32> to vector<1x1x1xf32>
    %14 = vector.extract %13[0, 0, 0] : f32 from vector<1x1x1xf32>
    %15 = vector.broadcast %14 : f32 to vector<1x1xf32>
    %c0_6 = arith.constant 0 : index
    %c0_7 = arith.constant 0 : index
    %16 = vector.load %arg3[%c0_6, %c0_7] : memref<16x8xf32, #tpu.memory_space<vmem>>, vector<16x8xf32>
    %cst_8 = arith.constant dense<0.000000e+00> : vector<16x256xf32>
    %17 = tpu.matmul %16, %4, %cst_8 {dimension_numbers = #tpu.dot_dimension_numbers<[1], [0], [0], [1], [0, 0, 1, 1], [], []>} : vector<16x8xf32>, vector<8x256xf32>, vector<16x256xf32> -> vector<16x256xf32>
    %cst_9 = arith.constant 0.000000e+00 : f32
    %18 = vector.broadcast %cst_9 : f32 to vector<16x256xf32>
    %19 = arith.maximumf %17, %18 : vector<16x256xf32>
    %20 = vector.extract_strided_slice %19 {offsets = [0, 0], sizes = [8, 256], strides = [1, 1]} : vector<16x256xf32> to vector<8x256xf32>
    %21 = vector.extract_strided_slice %19 {offsets = [8, 0], sizes = [8, 256], strides = [1, 1]} : vector<16x256xf32> to vector<8x256xf32>
    %22 = arith.subf %20, %21 : vector<8x256xf32>
    %23 = arith.mulf %22, %22 : vector<8x256xf32>
    %24 = vector.shape_cast %23 : vector<8x256xf32> to vector<1x8x256xf32>
    %cst_10 = arith.constant dense<0.000000e+00> : vector<1xf32>
    %25 = vector.multi_reduction <add>, %24, %cst_10 [1, 2] : vector<1x8x256xf32> to vector<1xf32>
    %26 = vector.shape_cast %25 : vector<1xf32> to vector<1x1x1xf32>
    %27 = vector.extract %26[0, 0, 0] : f32 from vector<1x1x1xf32>
    %28 = vector.broadcast %27 : f32 to vector<1x1xf32>
    %c0_11 = arith.constant 0 : index
    %c0_12 = arith.constant 0 : index
    %29 = vector.load %arg4[%c0_11, %c0_12] : memref<1x1xf32, #tpu.memory_space<vmem>>, vector<1x1xf32>
    %cst_13 = arith.constant 4.8828125E-4 : f32
    %30 = vector.broadcast %cst_13 : f32 to vector<1x1xf32>
    %31 = arith.mulf %30, %15 : vector<1x1xf32>
    %cst_14 = arith.constant 2.44140625E-4 : f32
    %32 = vector.broadcast %cst_14 : f32 to vector<1x1xf32>
    %33 = arith.mulf %32, %28 : vector<1x1xf32>
    %34 = arith.addf %31, %33 : vector<1x1xf32>
    %35 = arith.addf %29, %34 : vector<1x1xf32>
    %c0_15 = arith.constant 0 : index
    %c0_16 = arith.constant 0 : index
    %36 = vector.load %arg4[%c0_15, %c0_16] : memref<1x1xf32, #tpu.memory_space<vmem>>, vector<1x1xf32>
    tpu.vector_store %arg4[%c0_15, %c0_16], %35 {strides = array<i32>} : memref<1x1xf32, #tpu.memory_space<vmem>>, vector<1x1xf32>,
    return
  }
  func.func @transform_0(%arg0: i32) -> (i32, i32, i32) {
    %c0_i32 = arith.constant 0 : i32
    %c0_i32_0 = arith.constant 0 : i32
    %c0_i32_1 = arith.constant 0 : i32
    return %arg0, %c0_i32, %c0_i32_0 : i32, i32, i32
  }
  func.func @transform_1(%arg0: i32) -> (i32, i32) {
    %c0_i32 = arith.constant 0 : i32
    %c0_i32_0 = arith.constant 0 : i32
    %c0_i32_1 = arith.constant 0 : i32
    return %c0_i32, %c0_i32_0 : i32, i32
  }
  func.func @transform_2(%arg0: i32) -> (i32, i32) {
    %c0_i32 = arith.constant 0 : i32
    %c0_i32_0 = arith.constant 0 : i32
    %c0_i32_1 = arith.constant 0 : i32
    return %c0_i32, %c0_i32_0 : i32, i32
  }
  func.func @transform_3(%arg0: i32) -> (i32, i32) {
    %c0_i32 = arith.constant 0 : i32
    %c0_i32_0 = arith.constant 0 : i32
    %c0_i32_1 = arith.constant 0 : i32
    return %c0_i32, %c0_i32_0 : i32, i32
  }
}

</mosaic_0001>

<bundles_post_ra>
// kernel: tpu_custom_call.1
= control target key start
LH: loop header
LB: loop body
LE: loop exit
PB: predicated region body
PF: predicated region fallthrough
CT: control target
= control target key end

     0   :  { %8 = vsyncpa [#allocation3], 0  ;;  %s881_s0 = inlined_call_operand.hbm [shape: f32[2,8,256], index: 0, kind: input, shape index: {}]   ;;  %s882_s1 = inlined_call_operand.hbm [shape: f32[256,256], index: 1, kind: input, shape index: {}]   ;;  %s883_s2 = inlined_call_operand.vmem [shape: f32[16,8], index: 2, kind: input, shape index: {}]   ;;  %s884_s3 = inlined_call_operand.hbm [shape: f32[1,1], index: 3, kind: output, shape index: {}]  }
   0x1   :  { %10 = vsyncpa [#allocation3 + $0x1], 0 }
   0x2   :  { %11 = vsyncpa [#allocation6], 0 }
   0x3   :  { %12 = vsyncpa [#allocation4], 0  ;;  %s763_s12 = smov 0   ;;  %s765_s13 = smov 0  }
   0x4   :  { %s767_s14 = smov 0   ;;  %s769_s15 = smov 0  }
   0x5 LB: > { %s123_s18 = sshll.u32 %s882_s1, 4  ;;  %s785_s19 = sadd.s32 4294967295, %s736_s15   ;;  %s736_s15 = sphi %s769_s15, %s891_s15   ;;  %s732_s14 = sphi %s767_s14, %s890_s14   ;;  %s728_s13 = sphi %s765_s13, %s889_s13   ;;  %s724_s12 = sphi %s763_s12, %s888_s12   ;;  %s124_s18 = int_to_ptr.hbm [resolvable:$true] %s123_s18 }
   0x6   : > { %p521_p0 = scmp.ge.s32.totalorder %s736_s15, 1  ;;  %p39_p1 = scmp.eq.s32.totalorder %s785_s19, 0 }
   0x7   : > { %p112_p2 = scmp.lt.s32.totalorder %s736_s15, 3  ;;  %p522_p3 = scmp.ne.s32.totalorder %s785_s19, 0 }
   0x8   : > { %s738_s21 = smov [#allocation5]   ;;  %s739_s23 = smov 256  }
   0x9   : > { %p791_p4 = pnand %p521_p0, %p112_p2  ;;  %s125_s22 = sshll.u32 %s738_s21, 4  ;;  %s126_s22 = int_to_ptr.vmem [resolvable:$true] %s125_s22 }
   0xa   : > { %s740_s24 = smov 16   ;;  %s800_s25 = sadd.s32 1, %s736_s15  }
   0xb   : > { %p556_p5 = pneg %p791_p4  ;;  %s22_s26 = ssub.s32 %s736_s15, %s800_s25 }
   0xc   : > { %s25_s27 = sadd.s32 1, %s732_s14  ;;  %p23_p7 = scmp.eq.s32.totalorder %s22_s26, 0 }
   0xd   : > { %p557_p6 = pnand %p556_p5, %p39_p1  ;;  %p32_p8 = scmp.ne.s32.totalorder %s732_s14, %s728_s13 }
   0xe   : > { %p33_p9 = scmp.eq.s32.totalorder %s736_s15, 0  ;;  %p38_p10 = scmp.ne.s32.totalorder %s728_s13, %s724_s12 }
   0xf   : > { %559 = dma.hbm_to_vmem [thread:$0]  (!%p557_p6), %s124_s18, 8192, %s126_s22, [#allocation6], %s739_s23, %s739_s23, %s740_s24  }
  0x10   : > { %s810_s28 = scalar_select %p23_p7, %s732_s14, %s25_s27  }
  0x11   : > { %p34_p11 = por %p33_p9, %p32_p8  ;;  %p814_p12 = por %p39_p1, %p38_p10 }
  0x12   : > { %p565_p13 = scmp.lt.s32.totalorder %s736_s15, 2  ;;  %s142_s30 = sand.u32 1, %s732_s14  }
  0x13   : > { %s524_s4 = sshll.u32 %s142_s30, 4  ;;  %s539_s5 = sshll.u32 %s736_s15, 4 }
  0x14   : > { %s151_s8 = scalar_lea.hbm %s881_s0, %s539_s5  ;;  %s146_s9 = scalar_lea.vmem [#allocation2], %s524_s4 }
  0x15   : > { %s155_s10 = sshll.u32 %s146_s9, 4  ;;  %s153_s11 = sshll.u32 %s151_s8, 4  ;;  %s156_s10 = int_to_ptr.vmem [resolvable:$true] %s155_s10  ;;  %s154_s11 = int_to_ptr.hbm [resolvable:$true] %s153_s11 }
  0x16   : > { %p824_p0 = pnand %p565_p13, %p34_p11  ;;  %s143_s16 = scalar_lea.sflag [#allocation3], %s142_s30 }
  0x17   : > { %s636_s17 = sshra.s32 %s154_s11, 4  ;;  %s643_s22 = scalar_lea.hbm %s881_s0, 32  ;;  %s637_s17 = int_to_ptr.hbm [resolvable:$true] %s636_s17 }
  0x18   : > { %s638_s18 = scalar_lea.hbm %s637_s17, 16  ;;  %p640_p5 = pneg %p824_p0 }
  0x19   : > { %p639_p2 = scmp.ne.s32.totalorder %s637_s17, %s638_s18  ;;  %p644_p8 = scmp.lt.s32.totalorder %s637_s17, %s881_s0 }
  0x1a   : > { %p645_p9 = scmp.lt.s32.totalorder %s643_s22, %s638_s18 }
  0x1b   : > { %p641_p6 = pnand %p640_p5, %p639_p2 }
  0x1c   : > { %p646_p10 = por %p645_p9, %p644_p8 }
  0x1d   : > { %p642_p7 = pneg %p641_p6 }
  0x1f   : > { %p647_p11 = pnand %p646_p10, %p642_p7 }
  0x21   : > { %650 = shalt.err (!%p647_p11)
}
  0x22   : > { %563 = dma.hbm_to_vmem [thread:$0]  (!%p824_p0), %s154_s11, 256, %s156_s10, %s143_s16  }
  0x23   : > { %164 = sbr.rel (%p791_p4) target bundleno = 420 (0x1a4), region = 32  ;;  %s166_s26 = sand.u32 (!%p791_p4), 1, %s728_s13  }
  0x24   : > { %s841_s27 = sshll.u32 (!%p791_p4), %s166_s26, 4  ;;  %s167_s30 = scalar_lea.sflag (!%p791_p4), [#allocation3], %s166_s26 }
  0x25   : > { %s170_s4 = scalar_lea.vmem (!%p791_p4), [#allocation2], %s841_s27 }
  0x28   : > { %711 = dma.done.wait (%p814_p12), %s167_s30, 256  }
  0x29   : > { %713 = vsyncadd (%p814_p12), %s167_s30, 4294967040 }
  0x2a   : > { %715 = dma.done.wait (%p39_p1), [#allocation6], 8192  }
  0x2b   : > { %717 = vsyncadd (%p39_p1), [#allocation6], 4294959104  ;;  %197 = sbr.rel (%p522_p3) target bundleno = 50 (0x32), region = 44 }
  0x30   : > { %vm198_vm0 = vcmask 0   ;;  %v741_v0 = vmov 0.0  }
  0x31   : > { %199 = vst.msk [vmem:[#allocation7] sm:$0x1] %vm198_vm0, %v741_v0 }
  0x32 PF: > { %v241_v1 = vld [vmem:[#allocation5 + $0xf8] sm:$0xff]  ;;  %v239_v3 = vld [vmem:[#allocation5 + $0xe8] sm:$0xff]  ;;  %v240_v7 = vld [vmem:[#allocation5 + $0xf0] sm:$0xff]  ;;  %vm372_vm1 = vcmask 64512   ;;  %vm356_vm2 = vcmask 1043456   ;;  %s742_s9 = smov [#allocation7]  }
  0x33   : > { %v273_v2 = vld [vmem:[#allocation5 + $0x1f8] sm:$0xff]  ;;  %314 = vmatpush.msra.mxu2 %v241_v1  ;;  %v271_v4 = vld [vmem:[#allocation5 + $0x1e8] sm:$0xff]  ;;  %v272_v8 = vld [vmem:[#allocation5 + $0x1f0] sm:$0xff]  ;;  %274 = vmatpush.msra.mxu0 %v240_v7  ;;  %s457_s10 = sshll.u32 %s742_s9, 4  ;;  %s459_s16 = sshll.u32 %s884_s3, 4  ;;  %vm449_vm3 = vcmask 0   ;;  %s458_s10 = int_to_ptr.vmem [resolvable:$true] %s457_s10  ;;  %s460_s16 = int_to_ptr.hbm [resolvable:$true] %s459_s16 }
  0x34   : > { %334 = vmatpush.msra.mxu3 %v273_v2  ;;  %v237_v5 = vld [vmem:[#allocation5 + $0xd8] sm:$0xff]  ;;  %v238_v9 = vld [vmem:[#allocation5 + $0xe0] sm:$0xff]  ;;  %294 = vmatpush.msra.mxu1 %v272_v8  ;;  %v235_v11 = vld [vmem:[#allocation5 + $0xc8] sm:$0xff]  ;;  %p567_p1 = scmp.eq.s32.totalorder %s785_s19, 1 }
  0x35   : > { %v269_v6 = vld [vmem:[#allocation5 + $0x1d8] sm:$0xff]  ;;  %315 = vmatpush.msra.mxu2 %v239_v3  ;;  %v270_v10 = vld [vmem:[#allocation5 + $0x1e0] sm:$0xff]  ;;  %v267_v12 = vld [vmem:[#allocation5 + $0x1c8] sm:$0xff]  ;;  %275 = vmatpush.msra.mxu0 %v238_v9 }
  0x36   : > { %335 = vmatpush.msra.mxu3 %v271_v4  ;;  %v236_v13 = vld [vmem:[#allocation5 + $0xd0] sm:$0xff]  ;;  %295 = vmatpush.msra.mxu1 %v270_v10  ;;  %v233_v15 = vld [vmem:[#allocation5 + $0xb8] sm:$0xff]  ;;  %v234_v17 = vld [vmem:[#allocation5 + $0xc0] sm:$0xff] }
  0x37   : > { %316 = vmatpush.msra.mxu2 %v237_v5  ;;  %v268_v14 = vld [vmem:[#allocation5 + $0x1d0] sm:$0xff]  ;;  %v265_v16 = vld [vmem:[#allocation5 + $0x1b8] sm:$0xff]  ;;  %v266_v18 = vld [vmem:[#allocation5 + $0x1c0] sm:$0xff]  ;;  %276 = vmatpush.msra.mxu0 %v236_v13 }
  0x38   : > { %336 = vmatpush.msra.mxu3 %v269_v6  ;;  %296 = vmatpush.msra.mxu1 %v268_v14  ;;  %v231_v19 = vld [vmem:[#allocation5 + $0xa8] sm:$0xff]  ;;  %v232_v21 = vld [vmem:[#allocation5 + $0xb0] sm:$0xff]  ;;  %v229_v23 = vld [vmem:[#allocation5 + $0x98] sm:$0xff] }
  0x39   : > { %317 = vmatpush.msra.mxu2 %v235_v11  ;;  %v263_v20 = vld [vmem:[#allocation5 + $0x1a8] sm:$0xff]  ;;  %v264_v22 = vld [vmem:[#allocation5 + $0x1b0] sm:$0xff]  ;;  %277 = vmatpush.msra.mxu0 %v234_v17  ;;  %v261_v24 = vld [vmem:[#allocation5 + $0x198] sm:$0xff] }
  0x3a   : > { %337 = vmatpush.msra.mxu3 %v267_v12  ;;  %297 = vmatpush.msra.mxu1 %v266_v18  ;;  %v230_v25 = vld [vmem:[#allocation5 + $0xa0] sm:$0xff]  ;;  %v227_v27 = vld [vmem:[#allocation5 + $0x88] sm:$0xff]  ;;  %v228_v29 = vld [vmem:[#allocation5 + $0x90] sm:$0xff] }
  0x3b   : > { %318 = vmatpush.msra.mxu2 %v233_v15  ;;  %v262_v26 = vld [vmem:[#allocation5 + $0x1a0] sm:$0xff]  ;;  %278 = vmatpush.msra.mxu0 %v232_v21  ;;  %v259_v28 = vld [vmem:[#allocation5 + $0x188] sm:$0xff]  ;;  %v260_v30 = vld [vmem:[#allocation5 + $0x190] sm:$0xff] }
  0x3c   : > { %338 = vmatpush.msra.mxu3 %v265_v16  ;;  %298 = vmatpush.msra.mxu1 %v264_v22  ;;  %v225_v31 = vld [vmem:[#allocation5 + $0x78] sm:$0xff]  ;;  %v226_v33 = vld [vmem:[#allocation5 + $0x80] sm:$0xff]  ;;  %v223_v35 = vld [vmem:[#allocation5 + $0x68] sm:$0xff] }
  0x3d   : > { %319 = vmatpush.msra.mxu2 %v231_v19  ;;  %279 = vmatpush.msra.mxu0 %v230_v25  ;;  %v257_v32 = vld [vmem:[#allocation5 + $0x178] sm:$0xff]  ;;  %v258_v34 = vld [vmem:[#allocation5 + $0x180] sm:$0xff]  ;;  %v255_v36 = vld [vmem:[#allocation5 + $0x168] sm:$0xff] }
  0x3e   : > { %339 = vmatpush.msra.mxu3 %v263_v20  ;;  %299 = vmatpush.msra.mxu1 %v262_v26  ;;  %v224_v37 = vld [vmem:[#allocation5 + $0x70] sm:$0xff]  ;;  %v221_v39 = vld [vmem:[#allocation5 + $0x58] sm:$0xff]  ;;  %v222_v41 = vld [vmem:[#allocation5 + $0x60] sm:$0xff] }
  0x3f   : > { %320 = vmatpush.msra.mxu2 %v229_v23  ;;  %280 = vmatpush.msra.mxu0 %v228_v29  ;;  %v256_v38 = vld [vmem:[#allocation5 + $0x170] sm:$0xff]  ;;  %v253_v40 = vld [vmem:[#allocation5 + $0x158] sm:$0xff]  ;;  %v254_v42 = vld [vmem:[#allocation5 + $0x160] sm:$0xff] }
  0x40   : > { %340 = vmatpush.msra.mxu3 %v261_v24  ;;  %300 = vmatpush.msra.mxu1 %v260_v30  ;;  %v219_v43 = vld [vmem:[#allocation5 + $0x48] sm:$0xff]  ;;  %v220_v45 = vld [vmem:[#allocation5 + $0x50] sm:$0xff]  ;;  %v217_v49 = vld [vmem:[#allocation5 + $0x38] sm:$0xff] }
  0x41   : > { %321 = vmatpush.msra.mxu2 %v227_v27  ;;  %281 = vmatpush.msra.mxu0 %v226_v33  ;;  %v251_v44 = vld [vmem:[#allocation5 + $0x148] sm:$0xff]  ;;  %v252_v46 = vld [vmem:[#allocation5 + $0x150] sm:$0xff]  ;;  %v249_v50 = vld [vmem:[#allocation5 + $0x138] sm:$0xff] }
  0x42   : > { %341 = vmatpush.msra.mxu3 %v259_v28  ;;  %301 = vmatpush.msra.mxu1 %v258_v34  ;;  %v200_v47 = vld [vmem:[%s170_s4] sm:$0xff]  ;;  %v201_v48 = vld [vmem:[%s170_s4 + $0x8] sm:$0xff] }
  0x43   : > { %322 = vmatpush.msra.mxu2 %v225_v31  ;;  %282 = vmatpush.msra.mxu0 %v224_v37  ;;  %v218_v51 = vld [vmem:[#allocation5 + $0x40] sm:$0xff]  ;;  %v215_v53 = vld [vmem:[#allocation5 + $0x28] sm:$0xff]  ;;  %v204_v55 = vrot.slane %v200_v47, 4  ;;  %v205_v56 = vrot.slane %v201_v48, 4  ;;  %v216_v57 = vld [vmem:[#allocation5 + $0x30] sm:$0xff] }
  0x44   : > { %342 = vmatpush.msra.mxu3 %v257_v32  ;;  %302 = vmatpush.msra.mxu1 %v256_v38  ;;  %v250_v52 = vld [vmem:[#allocation5 + $0x140] sm:$0xff]  ;;  %v247_v54 = vld [vmem:[#allocation5 + $0x128] sm:$0xff]  ;;  %v248_v58 = vld [vmem:[#allocation5 + $0x130] sm:$0xff] }
  0x45   : > { %323 = vmatpush.msra.mxu2 %v223_v35  ;;  %283 = vmatpush.msra.mxu0 %v222_v41  ;;  %v213_v59 = vld [vmem:[#allocation5 + $0x18] sm:$0xff]  ;;  %v214_v61 = vld [vmem:[#allocation5 + $0x20] sm:$0xff]  ;;  %v211_v63 = vld [vmem:[#allocation5 + $0x8] sm:$0xff]  ;;  %v208_v1 = vsub.f32 %v200_v47, %v204_v55  ;;  %v209_v2 = vsub.f32 %v201_v48, %v205_v56 }
  0x46   : > { %343 = vmatpush.msra.mxu3 %v255_v36  ;;  %303 = vmatpush.msra.mxu1 %v254_v42  ;;  %v245_v60 = vld [vmem:[#allocation5 + $0x118] sm:$0xff]  ;;  %v246_v62 = vld [vmem:[#allocation5 + $0x120] sm:$0xff]  ;;  %v243_v0 = vld [vmem:[#allocation5 + $0x108] sm:$0xff] }
  0x47   : > { %324 = vmatpush.msra.mxu2 %v221_v39  ;;  %284 = vmatpush.msra.mxu0 %v220_v45  ;;  %v212_v3 = vld [vmem:[#allocation5 + $0x10] sm:$0xff]  ;;  %v210_v5 = vld [vmem:[#allocation5] sm:$0xff]  ;;  %v371_v7 = vld [vmem:[%s883_s2 + $0x8] sm:$0xff] }
  0x48   : > { %344 = vmatpush.msra.mxu3 %v253_v40  ;;  %304 = vmatpush.msra.mxu1 %v252_v46  ;;  %v244_v4 = vld [vmem:[#allocation5 + $0x110] sm:$0xff]  ;;  %v242_v6 = vld [vmem:[#allocation5 + $0x100] sm:$0xff] }
  0x49   : > { %325 = vmatpush.msra.mxu2 %v219_v43  ;;  %285 = vmatpush.msra.mxu0 %v218_v51  ;;  %v370_v8 = vld [vmem:[%s883_s2] sm:$0xff] }
  0x4a   : > { %345 = vmatpush.msra.mxu3 %v251_v44  ;;  %305 = vmatpush.msra.mxu1 %v250_v52  ;;  %v444_v51 = vld [vmem:[#allocation7] sm:$0x1] }
  0x4b   : > { %326 = vmatpush.msra.mxu2 %v217_v49  ;;  %286 = vmatpush.msra.mxu0 %v216_v57 }
  0x4c   : > { %346 = vmatpush.msra.mxu3 %v249_v50  ;;  %306 = vmatpush.msra.mxu1 %v248_v58 }
  0x4d   : > { %327 = vmatpush.msra.mxu2 %v215_v53  ;;  %287 = vmatpush.msra.mxu0 %v214_v61 }
  0x4e   : > { %347 = vmatpush.msra.mxu3 %v247_v54  ;;  %307 = vmatpush.msra.mxu1 %v246_v62 }
  0x4f   : > { %328 = vmatpush.msra.mxu2 %v213_v59  ;;  %288 = vmatpush.msra.mxu0 %v212_v3 }
  0x50   : > { %348 = vmatpush.msra.mxu3 %v245_v60  ;;  %308 = vmatpush.msra.mxu1 %v244_v4 }
  0x51   : > { %329 = vmatpush.msra.mxu2 %v211_v63  ;;  %289 = vmatpush.msra.mxu0 %v210_v5 }
  0x52   : > { %349 = vmatpush.msra.mxu3 %v243_v0  ;;  %330 = vmatmul.f32.vlgmr.msra.gmra.mxu2 %v208_v1 }
  0x53   : > { %350 = vmatmul.f32.vlgmr.msra.gmra.mxu3 %v209_v2  ;;  %540 = vmatpush.msrb.mxu2 %v200_v47 }
  0x54   : > { %541 = vmatpush.msrb.mxu3 %v201_v48  ;;  %309 = vmatpush.msra.mxu1 %v242_v6 }
  0x55   : > { %290 = vmatmul.f32.vlgmr.msra.gmra.mxu0 %v208_v1  ;;  %310 = vmatmul.f32.vlgmr.msra.gmra.mxu1 %v209_v2 }
  0x56   : > { %394 = vmatpush.msrb.mxu0 %v200_v47  ;;  %417 = vmatpush.msrb.mxu1 %v201_v48 }
  0x5a   : > { %532 = vmatmul.msk.f32.vlgmr.msrb.gmra.mxu2 %vm372_vm1, %v371_v7 }
  0x5b   : > { %534 = vmatmul.msk.f32.vlgmr.msrb.gmra.mxu3 %vm372_vm1, %v371_v7 }
  0x5d   : > { %531 = vmatmul.msk.f32.vlgmr.msrb.gmra.mxu0 %vm372_vm1, %v370_v8  ;;  %533 = vmatmul.msk.f32.vlgmr.msrb.gmra.mxu1 %vm372_vm1, %v370_v8 }
  0xd2   : > { %v291_v9 = vpop.f32.mrf.mxu0  ;;  %v311_v10 = vpop.f32.mrf.mxu1 }
  0xd3   : > { %v312_v11 = vadd.f32 %v311_v10, %v291_v9 }
  0xd5   : > { %v331_v12 = vpop.f32.mrf.mxu2  ;;  %v354_v15 = vand.u32 2147483647, %v312_v11 }
  0xd6   : > { %v351_v13 = vpop.f32.mrf.mxu3 }
  0xd7   : > { %v352_v14 = vadd.f32 %v351_v13, %v331_v12  ;;  %v357_v17 = vsel %vm356_vm2, %v354_v15, 0.0 }
  0xd9   : > { %v355_v16 = vand.u32 2147483647, %v352_v14 }
  0xda   : > { %v396_v20 = vpop.f32.mrf.mxu0  ;;  %v419_v21 = vpop.f32.mrf.mxu1 }
  0xdb   : > { %v358_v18 = vsel %vm356_vm2, %v355_v16, 0.0  ;;  %v425_v22 = vmax.f32 %v396_v20, 0.0  ;;  %v426_v24 = vmax.f32 %v419_v21, 0.0 }
  0xdc   : > { %v359_v19 = vadd.f32 %v358_v18, %v357_v17 }
  0xdd   : > { %v399_v23 = vpop.f32.mrf.mxu2 }
  0xde   : > { %v422_v25 = vpop.f32.mrf.mxu3  ;;  %360 = vadd.xlane.f32.xlu0 %v359_v19  ;;  %v427_v26 = vmax.f32 %v399_v23, 0.0 }
  0xdf   : > { %v428_v27 = vmax.f32 %v422_v25, 0.0 }
  0xe0   : > { %v429_v28 = vsub.f32 %v425_v22, %v427_v26 }
  0xe1   : > { %v430_v29 = vsub.f32 %v426_v24, %v428_v27 }
  0xe2   : > { %v431_v30 = vmul.f32 %v429_v28, %v429_v28 }
  0xe3   : > { %v432_v31 = vmul.f32 %v430_v29, %v430_v29 }
  0xe5   : > { %v433_v32 = vadd.f32 %v432_v31, %v431_v30 }
  0xe7   : > { %434 = vadd.xlane.f32.xlu0 %v433_v32 }
 0x151   : > { %v361_v33 = vpop.xlane.xlu0 %360 }
 0x152   : > { %v362_v34 = vrot.slane %v361_v33, 4 }
 0x154   : > { %v363_v35 = vadd.f32 %v362_v34, %v361_v33 }
 0x156   : > { %v364_v36 = vrot.slane %v363_v35, 2 }
 0x158   : > { %v365_v37 = vadd.f32 %v364_v36, %v363_v35 }
 0x15a   : > { %v435_v38 = vpop.xlane.xlu0 %434  ;;  %v366_v39 = vrot.slane %v365_v37, 1 }
 0x15b   : > { %v436_v40 = vrot.slane %v435_v38, 4 }
 0x15c   : > { %v367_v41 = vadd.f32 %v366_v39, %v365_v37 }
 0x15d   : > { %v437_v42 = vadd.f32 %v436_v40, %v435_v38 }
 0x15e   : > { %542 = vpush %v367_v41 }
 0x15f   : > { %v438_v43 = vrot.slane %v437_v42, 2 }
 0x161   : > { %v439_v44 = vadd.f32 %v438_v43, %v437_v42 }
 0x163   : > { %v440_v45 = vrot.slane %v439_v44, 1 }
 0x165   : > { %v441_v46 = vadd.f32 %v440_v45, %v439_v44 }
 0x167   : > { %544 = vpush %v441_v46 }
 0x18f   : > { %s543_s7 = spop %542 }
 0x190   : > { %v369_v47 = vstv %s543_s7 }
 0x191   : > { %v445_v49 = vmul.f32 0.00048828125, %v369_v47 }
 0x198   : > { %s545_s8 = spop %544 }
 0x199   : > { %v443_v48 = vstv %s545_s8 }
 0x19a   : > { %v446_v50 = vmul.f32 0.00024414063, %v443_v48 }
 0x19c   : > { %v447_v52 = vadd.f32 %v446_v50, %v445_v49 }
 0x19e   : > { %v448_v53 = vadd.f32 %v447_v52, %v444_v51 }
 0x1a0   : > { %450 = vst.msk [vmem:[#allocation7] sm:$0x1] %vm449_vm3, %v448_v53 }
 0x1a1   : > { %553 = dma.vmem_to_hbm [thread:$0]  (%p567_p1), %s458_s10, 16, %s460_s16, [#allocation4]  }
 0x1a2   : > { %719 = dma.done.wait (%p567_p1), [#allocation4], 16  }
 0x1a3   : > { %721 = vsyncadd (%p567_p1), [#allocation4], 4294967280 }
 0x1a4 PF: > { %p15_p3 = scmp.ge.s32.totalorder %s800_s25, 4   ;;  %s888_s12 = smov %s728_s13 }
 0x1a5   : > { %s889_s13 = smov %s732_s14  ;;  %s890_s14 = smov %s810_s28 }
 0x1a6   : > { %s891_s15 = smov %s800_s25  ;;  %17 = sbr.rel (!%p15_p3) target bundleno = 5 (0x5), region = 77 }
 0x1ab   :  { %473 = vsyncpa [#allocation3], 1 }
 0x1ac   :  { %475 = vsyncpa [#allocation3 + $0x1], 1 }
 0x1ad   :  { %476 = vsyncpa [#allocation6], 1 }
 0x1ae   :  { %477 = vsyncpa [#allocation4], 1 }
 0x1af   :  { %479 = vsyncpa [#allocation4 + $0x1], 1 }

</bundles_post_ra>
